<compile_context>
chip_gen: v5e
topology: v5e:2x2
jax: 0.10.0
libtpu: 0.0.40
codegen_flags: <defaults>
</compile_context>

<pallas_src>
import math

import jax
import jax.numpy as jnp
from jax.experimental import pallas as pl
from jax.experimental.pallas import tpu as pltpu

_LANES = 128
# 2048 rows x 128 lanes x 4 B = 1 MiB per f32 block; with double-buffered
# input+output this is ~4 MiB of VMEM — comfortably under the scoped limit on
# v5e (16 MiB), v6e (32 MiB) and v7x (32 MiB scoped / 64 MiB physical).
_MAX_TILE_ROWS = 2048


def _identity_kernel(x_ref, o_ref):
    # The "hot path" of the abstract base class: the tensor passes through the
    # decoder interface unchanged.
    o_ref[...] = x_ref[...]


def _pallas_identity_2d(x2d: jax.Array) -> jax.Array:
    """Lane-dense identity copy of a (rows, 128)-shaped slab."""
    rows, lanes = x2d.shape
    if rows <= _MAX_TILE_ROWS:
        tile_rows = rows          # single full-extent block (always legal)
        grid = (1,)
    else:
        tile_rows = _MAX_TILE_ROWS  # multiple of 8 → clean (8,128) tiles
        grid = (pl.cdiv(rows, tile_rows),)

    return pl.pallas_call(
        _identity_kernel,
        out_shape=jax.ShapeDtypeStruct((rows, lanes), x2d.dtype),
        grid=grid,
        in_specs=[pl.BlockSpec((tile_rows, lanes), lambda r: (r, 0))],
        out_specs=pl.BlockSpec((tile_rows, lanes), lambda r: (r, 0)),
        # Alias the output onto the input buffer: no fresh HBM allocation and
        # no extra round trip when the caller donates the input.
        input_output_aliases={0: 0},
        compiler_params=pltpu.CompilerParams(
            dimension_semantics=("parallel",),
            vmem_limit_bytes=32 * 1024 * 1024,
        ),
    )(x2d)


def openspeech_decoder_forward(x: jax.Array, *, via_pallas: bool = False) -> jax.Array:
    """'forward' for the abstract OpenspeechDecoder interface.

    Default: zero-copy pass-through (no data movement at all).
    via_pallas=True: route the tensor through a lane-dense, aliased Pallas
    VMEM copy kernel (interface-parity path).
    """
    if not via_pallas:
        # Highest-value optimization for an identity: do not move the data.
        return x

    total = math.prod(x.shape)
    if total >= _LANES and total % _LANES == 0:
        x2d = x.reshape(total // _LANES, _LANES)
    else:
        # Tiny / ragged sizes: single full-extent 2D block (still lane-major).
        last = x.shape[-1] if x.ndim >= 1 else 1
        x2d = x.reshape(max(total // max(last, 1), 1), last)
    y2d = _pallas_identity_2d(x2d)
    return y2d.reshape(x.shape)


def count_parameters() -> int:
    """Mirror of OpenspeechDecoder.count_parameters(): the abstract base class
    owns no parameters, so the count is 0."""
    return 0


def update_dropout(dropout_p: float) -> None:
    """Mirror of OpenspeechDecoder.update_dropout(): the base class has no
    Dropout children, so this is a no-op."""
    # TODO(synk): stateful child-module mutation has no Pallas equivalent.
    del dropout_p


if __name__ == "__main__":
    key = jax.random.PRNGKey(0)
    # Small shapes consistent with decoder inputs: batch=2, seq=8, hidden=32.
    x = jax.random.normal(key, (2, 8, 32), dtype=jnp.float32)

    # Fast (zero-copy) path.
    y_fast = openspeech_decoder_forward(x)
    jax.block_until_ready(y_fast)

    # Pallas interface-parity path (lane-dense, aliased copy kernel).
    y_kernel = openspeech_decoder_forward(x, via_pallas=True)
    jax.block_until_ready(y_kernel)

    assert y_fast.shape == x.shape and y_fast.dtype == x.dtype
    assert y_kernel.shape == x.shape and y_kernel.dtype == x.dtype
    assert bool(jnp.array_equal(y_fast, x))
    assert bool(jnp.array_equal(y_kernel, x))
    assert count_parameters() == 0
    update_dropout(0.1)

    print("KERNEL_OK")
</pallas_src>

<mosaic_0001>
module attributes {stable_mosaic.version = 11 : i64} {
  func.func @_identity_kernel(%arg0: i32, %arg1: memref<4x128xf32, #tpu.memory_space<vmem>>, %arg2: memref<4x128xf32, #tpu.memory_space<vmem>>) attributes {dimension_semantics = [#tpu.dimension_semantics<parallel>], iteration_bounds = array<i64: 1>, scalar_prefetch = 0 : i64, scratch_operands = 0 : i64, tpu.core_type = #tpu.core_type<tc>, window_params = [{transform_indices = @transform_0, window_bounds = array<i64: 4, 128>}, {transform_indices = @transform_1, window_bounds = array<i64: 4, 128>}]} {
    %c0 = arith.constant 0 : index
    %c0_0 = arith.constant 0 : index
    %0 = vector.load %arg1[%c0, %c0_0] : memref<4x128xf32, #tpu.memory_space<vmem>>, vector<4x128xf32>
    %c0_1 = arith.constant 0 : index
    %c0_2 = arith.constant 0 : index
    %1 = vector.load %arg2[%c0_1, %c0_2] : memref<4x128xf32, #tpu.memory_space<vmem>>, vector<4x128xf32>
    tpu.vector_store %arg2[%c0_1, %c0_2], %0 {strides = array<i32>} : memref<4x128xf32, #tpu.memory_space<vmem>>, vector<4x128xf32>,
    return
  }
  func.func @transform_0(%arg0: i32) -> (i32, i32) {
    %c0_i32 = arith.constant 0 : i32
    %c0_i32_0 = arith.constant 0 : i32
    return %arg0, %c0_i32 : i32, i32
  }
  func.func @transform_1(%arg0: i32) -> (i32, i32) {
    %c0_i32 = arith.constant 0 : i32
    %c0_i32_0 = arith.constant 0 : i32
    return %arg0, %c0_i32 : i32, i32
  }
}

</mosaic_0001>

<bundles_post_ra>
// kernel: tpu_custom_call.1
= control target key start
LH: loop header
LB: loop body
LE: loop exit
PB: predicated region body
PF: predicated region fallthrough
CT: control target
= control target key end

     0   :  { %6 = vsyncpa [#allocation3], 0  ;;  %s114_s0 = inlined_call_operand.hbm [shape: f32[4,128], index: 0, kind: input, shape index: {}, may-alias: {0,1}]   ;;  %s115_s1 = inlined_call_operand.hbm [shape: f32[4,128], index: 1, kind: output, shape index: {}, may-alias: {0,1}]  }
   0x1   :  { %7 = vsyncpa [#allocation4], 0  ;;  %s13_s8 = sshll.u32 %s114_s0, 4  ;;  %s96_s9 = smov [#allocation2]   ;;  %s14_s8 = int_to_ptr.hbm [resolvable:$true] %s13_s8 }
   0x2   :  { %s15_s10 = sshll.u32 %s96_s9, 4  ;;  %s16_s10 = int_to_ptr.vmem [resolvable:$true] %s15_s10 }
   0x3   :  { %18 = dma.hbm_to_vmem [thread:$0]  %s14_s8, 64, %s16_s10, [#allocation3]  }
   0x4   :  { %92 = dma.done.wait [#allocation3], 64  }
   0x5   :  { %93 = vsyncadd [#allocation3], 4294967232  ;;  %s97_s11 = smov [#allocation5]   ;;  %s32_s15 = sshll.u32 %s115_s1, 4  ;;  %v23_v0 = vld [vmem:[#allocation2] sm:$0xf]  ;;  %s33_s15 = int_to_ptr.hbm [resolvable:$true] %s32_s15 }
   0x6   :  { %s30_s12 = sshll.u32 %s97_s11, 4  ;;  %24 = vst [vmem:[#allocation5] sm:$0xf] %v23_v0  ;;  %s31_s12 = int_to_ptr.vmem [resolvable:$true] %s30_s12 }
   0x7   :  { %35 = dma.vmem_to_hbm [thread:$0]  %s31_s12, 64, %s33_s15, [#allocation4]  }
   0x8   :  { %94 = dma.done.wait [#allocation4], 64  }
   0x9   :  { %95 = vsyncadd [#allocation4], 4294967232 }
   0xa   :  { %40 = vsyncpa [#allocation3], 1 }
   0xb   :  { %41 = vsyncpa [#allocation4], 1 }

</bundles_post_ra>
